<compile_context>
chip_gen: v5e
topology: v5e:2x2
jax: 0.10.0
libtpu: 0.0.40
codegen_flags: <defaults>
</compile_context>

<pallas_src>
import functools

import jax
import jax.numpy as jnp
from jax import lax
from jax.experimental import pallas as pl
from jax.experimental.pallas import tpu as pltpu


def _row_multiple(itemsize: int) -> int:
    # Native sublane packing: f32 -> 8 rows, bf16 -> 16, int8/fp8 -> 32.
    return {4: 8, 2: 16, 1: 32}.get(itemsize, 8)


def _round_up(x: int, m: int) -> int:
    return ((x + m - 1) // m) * m


def _device_kind() -> str:
    try:
        return jax.devices()[0].device_kind.lower()
    except Exception:
        return ""


def _vmem_plan(kind: str):
    """(input/temps budget, scoped-VMEM limit to request) per generation."""
    if "v7" in kind or "7x" in kind or "v6" in kind or "6e" in kind:
        return 26 << 20, 34 << 20   # v6e: 128 MiB physical; v7x: 64 MiB physical
    if "v5" in kind:
        return 12 << 20, 16 << 20   # fits v5e's 16 MiB default scoped VMEM
    return 8 << 20, None            # unknown generation: stay conservative


def _default_num_partitions(kind: str) -> int:
    # The 2-way "parallel" split only pays on chips with 2 TensorCores per
    # device (v4 / v5p / v7x). On 1-TC chips it is just an extra serial grid
    # loop plus (for odd tile counts) a wasted duplicate-tile DMA.
    if any(t in kind for t in ("v7", "7x", "v4", "v5p")):
        return 2
    return 1


def _pick_tile_n(n, itemsize, n_inputs, budget):
    """Rows per grid step: as large as the VMEM budget allows."""
    # Each input strip occupies 128 lanes of VMEM regardless of its logical
    # width and is double-buffered by the pipeline; reserve ~4 lane-padded
    # f32 columns of headroom (2 KiB/row) for compiler temporaries of the
    # column upcast/sub/abs/mask chain.
    bytes_per_row = n_inputs * 2 * 128 * itemsize + 2048
    t = budget // bytes_per_row
    t = min(max(t, 8), 32768)
    m = _row_multiple(itemsize)
    t = max(m, (t // m) * m)
    return n if n <= t else t


def _mab_kernel(*refs, la, lb, n_total, two_inputs):
    if two_inputs:
        a_ref, b_ref, o_ref, acc_ref = refs
    else:
        a_ref, o_ref, acc_ref = refs
        b_ref = a_ref

    p = pl.program_id(0)
    i = pl.program_id(1)
    n_inner = pl.num_programs(1)

    @pl.when(i == 0)
    def _init():
        acc_ref[...] = jnp.zeros_like(acc_ref)

    tile_n = a_ref.shape[0]
    # Logical tile index (may point past the last real tile when the tile
    # count doesn't split evenly across partitions; those rows are masked
    # below while the DMA index_map clamps to a valid block).
    tile_idx = p * n_inner + i
    row0 = tile_idx * tile_n

    # 2-D keepdims column slices keep everything (sublane, lane) shaped;
    # upcast to f32 in-VMEM (no wrapper-side HBM copy).
    a_col = a_ref[:, la:la + 1].astype(jnp.float32)
    b_col = b_ref[:, lb:lb + 1].astype(jnp.float32)
    d = jnp.abs(a_col - b_col)                              # (tile_n, 1) f32

    full_tile = row0 + tile_n <= n_total

    @pl.when(full_tile)
    def _accumulate():
        # Steady state: no mask arithmetic, no per-row accumulator traffic.
        # One sublane (XLU) reduce per step, then a single scalar add.
        acc_ref[...] += jnp.sum(d, axis=0, keepdims=True)

    @pl.when(jnp.logical_not(full_tile))
    def _accumulate_tail():
        # Ragged tail / clamped duplicate tile only: neutralize padded rows
        # with a select (not a multiply) so NaN/Inf garbage cannot leak in.
        rows = row0 + lax.broadcasted_iota(jnp.int32, (tile_n, 1), 0)
        dm = jnp.where(rows < n_total, d, jnp.float32(0.0))
        acc_ref[...] += jnp.sum(dm, axis=0, keepdims=True)

    @pl.when(i == n_inner - 1)
    def _finalize():
        o_ref[...] = acc_ref[...]


def mean_abs_boundary_criterion(logits, class_a, class_b, *,
                                tile_n=None, num_partitions=None):
    """Pallas TPU implementation of MeanAbsBoundaryCriterion.forward."""
    n, c = logits.shape
    assert 0 <= class_a < c and 0 <= class_b < c

    # Lane strip geometry: DMA only the strip(s) holding the two classes.
    strip_w = c if c <= 128 else 128
    col_a, la = divmod(class_a, strip_w)
    col_b, lb = divmod(class_b, strip_w)
    two_inputs = col_a != col_b
    n_inputs = 2 if two_inputs else 1

    kind = _device_kind()
    budget, vmem_limit = _vmem_plan(kind)
    if num_partitions is None:
        num_partitions = _default_num_partitions(kind)

    itemsize = jnp.dtype(logits.dtype).itemsize
    m = _row_multiple(itemsize)
    auto_tile = tile_n is None
    if auto_tile:
        tile_n = _pick_tile_n(n, itemsize, n_inputs, budget)
    else:
        tile_n = n if tile_n >= n else max(m, (tile_n // m) * m)

    num_tiles = pl.cdiv(n, tile_n)
    n_par = max(1, min(num_partitions, num_tiles))

    if auto_tile and n_par > 1 and (num_tiles % n_par):
        # Rebalance: make the tile count a multiple of the partition count so
        # both TensorCores process the same number of real tiles (no fully
        # masked duplicate-tile DMA on one core while the other idles).
        target_tiles = _round_up(num_tiles, n_par)
        tile_n = min(n, max(m, _round_up(pl.cdiv(n, target_tiles), m)))
        num_tiles = pl.cdiv(n, tile_n)
        n_par = max(1, min(num_partitions, num_tiles))

    tiles_per_part = pl.cdiv(num_tiles, n_par)
    needs_clamp = (n_par * tiles_per_part) != num_tiles  # correctness fallback

    def row_block(p, i):
        t = p * tiles_per_part + i
        if needs_clamp:
            # Keep the DMA in bounds; the kernel masks these rows to zero.
            t = jnp.minimum(t, num_tiles - 1)
        return t

    in_specs = [pl.BlockSpec((tile_n, strip_w),
                             lambda p, i: (row_block(p, i), col_a))]
    operands = [logits]
    if two_inputs:
        in_specs.append(pl.BlockSpec((tile_n, strip_w),
                                     lambda p, i: (row_block(p, i), col_b)))
        operands.append(logits)

    kernel = functools.partial(
        _mab_kernel, la=la, lb=lb, n_total=n, two_inputs=two_inputs)

    out = pl.pallas_call(
        kernel,
        out_shape=jax.ShapeDtypeStruct((n_par, 1, 1), jnp.float32),
        grid_spec=pltpu.PrefetchScalarGridSpec(
            num_scalar_prefetch=0,
            grid=(n_par, tiles_per_part),
            in_specs=in_specs,
            out_specs=pl.BlockSpec((None, 1, 1), lambda p, i: (p, 0, 0)),
            scratch_shapes=[pltpu.VMEM((1, 1), jnp.float32)],
        ),
        compiler_params=pltpu.CompilerParams(
            dimension_semantics=("parallel", "arbitrary"),
            vmem_limit_bytes=vmem_limit,
        ),
    )(*operands)

    return jnp.sum(out) / jnp.float32(n)


if __name__ == "__main__":
    key = jax.random.PRNGKey(0)
    k0, k1, k2 = jax.random.split(key, 3)

    # Main example: small class count, as in the GNNInterpreter usage.
    class_a, class_b = 2, 5
    logits = jax.random.normal(k0, (16, 8), dtype=jnp.float32)
    result = jax.block_until_ready(
        mean_abs_boundary_criterion(logits, class_a, class_b))
    ref = jnp.mean(jnp.abs(logits[:, class_a] - logits[:, class_b]))
    assert jnp.allclose(result, ref, rtol=1e-5, atol=1e-6), (result, ref)

    # Extra coverage: bf16 input, C > 128 (two lane strips), ragged tail
    # (masked-tile path), multi-tile reduction (and clamped split on 2-TC).
    x2 = jax.random.normal(k1, (44, 200), dtype=jnp.float32).astype(jnp.bfloat16)
    r2 = jax.block_until_ready(
        mean_abs_boundary_criterion(x2, 5, 180, tile_n=16))
    ref2 = jnp.mean(jnp.abs(x2[:, 5].astype(jnp.float32)
                            - x2[:, 180].astype(jnp.float32)))
    assert jnp.allclose(r2, ref2, rtol=1e-5, atol=1e-5), (r2, ref2)

    # Extra coverage: both classes inside the same (non-zero) 128-lane strip,
    # exact multi-tile split (steady-state unmasked path only).
    x3 = jax.random.normal(k2, (40, 200), dtype=jnp.float32)
    r3 = jax.block_until_ready(
        mean_abs_boundary_criterion(x3, 130, 190, tile_n=8))
    ref3 = jnp.mean(jnp.abs(x3[:, 130] - x3[:, 190]))
    assert jnp.allclose(r3, ref3, rtol=1e-5, atol=1e-6), (r3, ref3)

    print("KERNEL_OK")
</pallas_src>

<mosaic_0001>
module attributes {stable_mosaic.version = 11 : i64} {
  func.func @_mab_kernel(%arg0: i32, %arg1: i32, %arg2: memref<16x8xf32, #tpu.memory_space<vmem>>, %arg3: memref<1x1x1xf32, #tpu.memory_space<vmem>>, %arg4: memref<1x1xf32, #tpu.memory_space<vmem>>) attributes {dimension_semantics = [#tpu.dimension_semantics<parallel>, #tpu.dimension_semantics<arbitrary>], iteration_bounds = array<i64: 1, 1>, scalar_prefetch = 0 : i64, scratch_operands = 1 : i64, tpu.core_type = #tpu.core_type<tc>, window_params = [{transform_indices = @transform_0, window_bounds = array<i64: 16, 8>}, {transform_indices = @transform_1, window_bounds = array<i64: 1, 1, 1>}]} {
    %c0_i32 = arith.constant 0 : i32
    %0 = arith.cmpi eq, %arg1, %c0_i32 : i32
    %1 = arith.extui %0 : i1 to i32
    %c0_i32_0 = arith.constant 0 : i32
    %2 = arith.cmpi ne, %1, %c0_i32_0 : i32
    scf.if %2 {
      %cst = arith.constant 0.000000e+00 : f32
      %20 = vector.broadcast %cst : f32 to vector<1x1xf32>
      %c0_8 = arith.constant 0 : index
      %c0_9 = arith.constant 0 : index
      %21 = vector.load %arg4[%c0_8, %c0_9] : memref<1x1xf32, #tpu.memory_space<vmem>>, vector<1x1xf32>
      tpu.vector_store %arg4[%c0_8, %c0_9], %20 {strides = array<i32>} : memref<1x1xf32, #tpu.memory_space<vmem>>, vector<1x1xf32>,
    } else {
    }
    %c1_i32 = arith.constant 1 : i32
    %3 = arith.muli %arg0, %c1_i32 : i32
    %4 = arith.addi %3, %arg1 : i32
    %c16_i32 = arith.constant 16 : i32
    %5 = arith.muli %4, %c16_i32 : i32
    %c0 = arith.constant 0 : index
    %c2 = arith.constant 2 : index
    %6 = vector.load %arg2[%c0, %c2] : memref<16x8xf32, #tpu.memory_space<vmem>>, vector<16x1xf32>
    %c0_1 = arith.constant 0 : index
    %c5 = arith.constant 5 : index
    %7 = vector.load %arg2[%c0_1, %c5] : memref<16x8xf32, #tpu.memory_space<vmem>>, vector<16x1xf32>
    %8 = arith.subf %6, %7 : vector<16x1xf32>
    %9 = math.absf %8 : vector<16x1xf32>
    %c16_i32_2 = arith.constant 16 : i32
    %10 = arith.addi %5, %c16_i32_2 : i32
    %c16_i32_3 = arith.constant 16 : i32
    %11 = arith.cmpi sle, %10, %c16_i32_3 : i32
    %12 = arith.extui %11 : i1 to i32
    %c0_i32_4 = arith.constant 0 : i32
    %13 = arith.cmpi ne, %12, %c0_i32_4 : i32
    scf.if %13 {
      %c0_8 = arith.constant 0 : index
      %c0_9 = arith.constant 0 : index
      %20 = vector.load %arg4[%c0_8, %c0_9] : memref<1x1xf32, #tpu.memory_space<vmem>>, vector<1x1xf32>
      %cst = arith.constant dense<0.000000e+00> : vector<1xf32>
      %21 = vector.multi_reduction <add>, %9, %cst [0] : vector<16x1xf32> to vector<1xf32>
      %22 = vector.shape_cast %21 : vector<1xf32> to vector<1x1xf32>
      %23 = arith.addf %20, %22 : vector<1x1xf32>
      %c0_10 = arith.constant 0 : index
      %c0_11 = arith.constant 0 : index
      %24 = vector.load %arg4[%c0_10, %c0_11] : memref<1x1xf32, #tpu.memory_space<vmem>>, vector<1x1xf32>
      tpu.vector_store %arg4[%c0_10, %c0_11], %23 {strides = array<i32>} : memref<1x1xf32, #tpu.memory_space<vmem>>, vector<1x1xf32>,
    } else {
    }
    %true = arith.constant true
    %14 = arith.xori %11, %true : i1
    %15 = arith.extui %14 : i1 to i32
    %c0_i32_5 = arith.constant 0 : i32
    %16 = arith.cmpi ne, %15, %c0_i32_5 : i32
    scf.if %16 {
      %20 = tpu.iota {dimensions = array<i32: 0>} : vector<16x1xi32>
      %21 = vector.broadcast %5 : i32 to vector<16x1xi32>
      %22 = arith.addi %21, %20 : vector<16x1xi32>
      %c16_i32_8 = arith.constant 16 : i32
      %23 = vector.broadcast %c16_i32_8 : i32 to vector<16x1xi32>
      %24 = arith.cmpi slt, %22, %23 : vector<16x1xi32>
      %cst = arith.constant 0.000000e+00 : f32
      %25 = vector.broadcast %cst : f32 to vector<16x1xf32>
      %26 = arith.select %24, %9, %25 : vector<16x1xi1>, vector<16x1xf32>
      %c0_9 = arith.constant 0 : index
      %c0_10 = arith.constant 0 : index
      %27 = vector.load %arg4[%c0_9, %c0_10] : memref<1x1xf32, #tpu.memory_space<vmem>>, vector<1x1xf32>
      %cst_11 = arith.constant dense<0.000000e+00> : vector<1xf32>
      %28 = vector.multi_reduction <add>, %26, %cst_11 [0] : vector<16x1xf32> to vector<1xf32>
      %29 = vector.shape_cast %28 : vector<1xf32> to vector<1x1xf32>
      %30 = arith.addf %27, %29 : vector<1x1xf32>
      %c0_12 = arith.constant 0 : index
      %c0_13 = arith.constant 0 : index
      %31 = vector.load %arg4[%c0_12, %c0_13] : memref<1x1xf32, #tpu.memory_space<vmem>>, vector<1x1xf32>
      tpu.vector_store %arg4[%c0_12, %c0_13], %30 {strides = array<i32>} : memref<1x1xf32, #tpu.memory_space<vmem>>, vector<1x1xf32>,
    } else {
    }
    %c0_i32_6 = arith.constant 0 : i32
    %17 = arith.cmpi eq, %arg1, %c0_i32_6 : i32
    %18 = arith.extui %17 : i1 to i32
    %c0_i32_7 = arith.constant 0 : i32
    %19 = arith.cmpi ne, %18, %c0_i32_7 : i32
    scf.if %19 {
      %c0_8 = arith.constant 0 : index
      %c0_9 = arith.constant 0 : index
      %20 = vector.load %arg4[%c0_8, %c0_9] : memref<1x1xf32, #tpu.memory_space<vmem>>, vector<1x1xf32>
      %c0_10 = arith.constant 0 : index
      %c0_11 = arith.constant 0 : index
      %c0_12 = arith.constant 0 : index
      %21 = vector.load %arg3[%c0_10, %c0_11, %c0_12] : memref<1x1x1xf32, #tpu.memory_space<vmem>>, vector<1x1x1xf32>
      %22 = vector.shape_cast %21 : vector<1x1x1xf32> to vector<1x1xf32>
      %23 = vector.shape_cast %20 : vector<1x1xf32> to vector<1x1x1xf32>
      tpu.vector_store %arg3[%c0_10, %c0_11, %c0_12], %23 {strides = array<i32>} : memref<1x1x1xf32, #tpu.memory_space<vmem>>, vector<1x1x1xf32>,
    } else {
    }
    return
  }
  func.func @transform_0(%arg0: i32, %arg1: i32) -> (i32, i32) {
    %c1_i32 = arith.constant 1 : i32
    %0 = arith.muli %arg0, %c1_i32 : i32
    %1 = arith.addi %0, %arg1 : i32
    %c0_i32 = arith.constant 0 : i32
    %c0_i32_0 = arith.constant 0 : i32
    return %1, %c0_i32 : i32, i32
  }
  func.func @transform_1(%arg0: i32, %arg1: i32) -> (i32, i32, i32) {
    %c0_i32 = arith.constant 0 : i32
    %c0_i32_0 = arith.constant 0 : i32
    %c0_i32_1 = arith.constant 0 : i32
    return %arg0, %c0_i32, %c0_i32_0 : i32, i32, i32
  }
}

</mosaic_0001>

<bundles_post_ra>
// kernel: tpu_custom_call.1
= control target key start
LH: loop header
LB: loop body
LE: loop exit
PB: predicated region body
PF: predicated region fallthrough
CT: control target
= control target key end

     0   :  { %s189_s0 = inlined_call_operand.vmem [shape: f32[16,8], index: 0, kind: input, shape index: {}]   ;;  %s190_s1 = inlined_call_operand.hbm [shape: f32[1,1,1], index: 1, kind: output, shape index: {}]  }
   0x1   :  { %v39_v0 = vld [vmem:[%s189_s0] sm:$0xff] }
   0x2   :  { %6 = vsyncpa [#allocation4], 0  ;;  %s166_s8 = smov 125   ;;  %v40_v1 = vld [vmem:[%s189_s0 + $0x8] sm:$0xff]  ;;  %vm59_vm0 = vcmask 23568   ;;  %s167_s11 = smov 126  }
   0x3   :  { %43 = vrot.lane.b32.xlu0 %v39_v0, %s166_s8  ;;  %vm35_vm1 = vcmask 0   ;;  %v168_v17 = vmov 0.0   ;;  %s169_s0 = smov [#allocation3]   ;;  %s121_s15 = sshll.u32 %s190_s1, 4  ;;  %s122_s15 = int_to_ptr.hbm [resolvable:$true] %s121_s15 }
   0x4   :  { %36 = vst.msk [vmem:[#allocation2] sm:$0x1] %vm35_vm1, %v168_v17  ;;  %s119_s12 = sshll.u32 %s169_s0, 4  ;;  %s120_s12 = int_to_ptr.vmem [resolvable:$true] %s119_s12 }
   0xb   :  { %45 = vrot.lane.b32.xlu0 %v40_v1, %s166_s8  ;;  %v58_v18 = vld [vmem:[#allocation2] sm:$0x1] }
  0x75   :  { %v44_v2 = vpop.permute.xlu0 %43 }
  0x76   :  { %v49_v3 = vsub.f32 %v39_v0, %v44_v2 }
  0x78   :  { %v51_v5 = vand.u32 2147483647, %v49_v3 }
  0x7a   :  { %v60_v8 = vsel %vm59_vm0, %v51_v5, 0.0 }
  0x7d   :  { %v46_v4 = vpop.permute.xlu0 %45 }
  0x7e   :  { %v50_v6 = vsub.f32 %v40_v1, %v46_v4 }
  0x80   :  { %v52_v7 = vand.u32 2147483647, %v50_v6 }
  0x82   :  { %v61_v9 = vsel %vm59_vm0, %v52_v7, 0.0 }
  0x83   :  { %v62_v10 = vadd.f32 %v61_v9, %v60_v8 }
  0x85   :  { %v63_v11 = vrot.slane %v62_v10, 4 }
  0x87   :  { %v64_v12 = vadd.f32 %v63_v11, %v62_v10 }
  0x89   :  { %v65_v13 = vrot.slane %v64_v12, 2 }
  0x8b   :  { %v66_v14 = vadd.f32 %v65_v13, %v64_v12 }
  0x8d   :  { %v67_v15 = vrot.slane %v66_v14, 1 }
  0x8f   :  { %v68_v16 = vadd.f32 %v67_v15, %v66_v14 }
  0x91   :  { %70 = vrot.lane.b32.xlu1 %v68_v16, %s167_s11 }
 0x103   :  { %v71_v19 = vpop.permute.xlu1 %70 }
 0x104   :  { %v73_v20 = vadd.f32 %v71_v19, %v58_v18 }
 0x106   :  { %75 = vst.msk [vmem:[#allocation2] sm:$0x1] %vm35_vm1, %v73_v20 }
 0x10d   :  { %v111_v21 = vld [vmem:[#allocation2] sm:$0x1] }
 0x10e   :  { %113 = vst.msk [vmem:[#allocation3] sm:$0x1] %vm35_vm1, %v111_v21 }
 0x10f   :  { %124 = dma.vmem_to_hbm [thread:$0]  %s120_s12, 16, %s122_s15, [#allocation4]  }
 0x110   :  { %164 = dma.done.wait [#allocation4], 16  }
 0x111   :  { %165 = vsyncadd [#allocation4], 4294967280 }
 0x112   :  { %129 = vsyncpa [#allocation4], 1 }

</bundles_post_ra>
